<compile_context>
chip_gen: v7x
topology: tpu7x:2x2x1
jax: 0.10.0
libtpu: 0.0.40
codegen_flags: <defaults>
</compile_context>

<pallas_src>
import functools

import jax
import jax.numpy as jnp
from jax.experimental import pallas as pl
from jax.experimental.pallas import tpu as pltpu

_LANES = 128


def _round_up(v, m):
    return (v + m - 1) // m * m


def _gem_kernel(x_ref, o_ref, *, p, eps):
    # x_ref: (sub_tile, 128, hw)   o_ref: (sub_tile, 128)
    x = x_ref[...].astype(jnp.float32)
    x = jnp.maximum(x, eps)                       # clamp(min=eps)

    # x ** p  (static p).  Small integer p -> VPU multiply chain so the single
    # EUP slot stays free; otherwise fall back to exp(p*log(x)) (x >= eps > 0).
    if float(p) == int(p) and 1 <= int(p) <= 16:
        xp = x
        for _ in range(int(p) - 1):
            xp = xp * x
    else:
        xp = jnp.exp(p * jnp.log(x))

    m = jnp.mean(xp, axis=-1)                     # (sub_tile, 128), mean over H*W
    # m ** (1/p): one transcendental pair per ROW (not per element) -> cheap.
    o_ref[...] = jnp.exp(jnp.log(m) * (1.0 / p)).astype(o_ref.dtype)


def gem_pool(x, p=3.0, eps=1e-6, vmem_block_bytes=4 * 1024 * 1024):
    """GeM pooling.  x: (N, C, H, W) float -> (N, C, 1, 1).  p is static."""
    # TODO(synk): learnable p (freeze_p=False) would pass p as an SMEM scalar
    # via scalar-prefetch instead of a Python float.
    N, C, H, W = x.shape
    rows, hw = N * C, H * W
    itemsize = jnp.dtype(x.dtype).itemsize

    # ---- choose the row tile ------------------------------------------------
    # Minimum granule is 128 rows (lane-dense output slab).  When tiling, the
    # tile is a multiple of 1024 rows so the output block is (>=8, 128), and is
    # sized so one input buffer stays around `vmem_block_bytes` (double-buffered
    # it remains well under the default scoped VMEM limit on v5e/v6e/v7x).
    rows_min = _round_up(rows, _LANES)
    if rows_min <= 1024 or rows_min * hw * itemsize <= vmem_block_bytes:
        tile_r = rows_min                         # single block == full array dims
    else:
        tile_r = max(1024, (vmem_block_bytes // (hw * itemsize)) // 1024 * 1024)
        tile_r = min(tile_r, _round_up(rows_min, 1024))
    # TODO(synk): very large H*W (one 128-row block exceeding VMEM) would need a
    # tiled spatial reduction with a scratch accumulator; GeM inputs are small.

    rows_pad = _round_up(rows, tile_r)
    num_tiles = rows_pad // tile_r
    sub_tile = tile_r // _LANES
    out_rows = rows_pad // _LANES

    x2d = x.reshape(rows, hw)
    if rows_pad != rows:
        x2d = jnp.pad(x2d, ((0, rows_pad - rows), (0, 0)))   # pad rows sliced off below
    x3d = x2d.reshape(out_rows, _LANES, hw)

    p_is_int = float(p) == int(p) and 1 <= int(p) <= 16
    flops = rows * hw * (2 + ((int(p) - 1) if p_is_int else 2))
    transcendentals = (0 if p_is_int else 2 * rows * hw) + 2 * rows
    bytes_accessed = rows_pad * hw * itemsize + out_rows * _LANES * itemsize

    kernel = functools.partial(_gem_kernel, p=float(p), eps=float(eps))
    out = pl.pallas_call(
        kernel,
        out_shape=jax.ShapeDtypeStruct((out_rows, _LANES), x.dtype),
        grid=(num_tiles,),
        in_specs=[pl.BlockSpec((sub_tile, _LANES, hw), lambda i: (i, 0, 0))],
        out_specs=pl.BlockSpec((sub_tile, _LANES), lambda i: (i, 0)),
        compiler_params=pltpu.CompilerParams(
            dimension_semantics=("parallel",)),
        cost_estimate=pl.CostEstimate(
            flops=flops,
            transcendentals=transcendentals,
            bytes_accessed=bytes_accessed),
    )(x3d)

    return out.reshape(-1)[:rows].reshape(N, C, 1, 1)


if __name__ == "__main__":
    key = jax.random.PRNGKey(0)
    N, C, H, W = 2, 4, 16, 16
    x = jax.random.normal(key, (N, C, H, W), dtype=jnp.float32)

    out = gem_pool(x, p=3.0, eps=1e-6)
    jax.block_until_ready(out)

    # pure-JAX reference with the same semantics as the PyTorch module
    ref = jnp.mean(jnp.clip(x, 1e-6, None) ** 3.0, axis=(2, 3),
                   keepdims=True) ** (1.0 / 3.0)
    assert out.shape == (N, C, 1, 1)
    assert jnp.allclose(out, ref, rtol=1e-5, atol=1e-5), \
        float(jnp.max(jnp.abs(out - ref)))

    print("KERNEL_OK")
</pallas_src>

<mosaic_0001>
module attributes {stable_mosaic.version = 11 : i64} {
  func.func @_gem_kernel(%arg0: i32, %arg1: memref<1x128x256xf32, #tpu.memory_space<vmem>>, %arg2: memref<1x128xf32, #tpu.memory_space<vmem>>) attributes {dimension_semantics = [#tpu.dimension_semantics<parallel>], iteration_bounds = array<i64: 1>, scalar_prefetch = 0 : i64, scratch_operands = 0 : i64, tpu.core_type = #tpu.core_type<tc>, window_params = [{transform_indices = @transform_0, window_bounds = array<i64: 1, 128, 256>}, {transform_indices = @transform_1, window_bounds = array<i64: 1, 128>}]} {
    %c0 = arith.constant 0 : index
    %c0_0 = arith.constant 0 : index
    %c0_1 = arith.constant 0 : index
    %0 = vector.load %arg1[%c0, %c0_0, %c0_1] : memref<1x128x256xf32, #tpu.memory_space<vmem>>, vector<1x128x256xf32>
    %cst = arith.constant 9.99999997E-7 : f32
    %1 = vector.broadcast %cst : f32 to vector<1x128x256xf32>
    %2 = arith.maximumf %0, %1 : vector<1x128x256xf32>
    %3 = arith.mulf %2, %2 : vector<1x128x256xf32>
    %4 = arith.mulf %3, %2 : vector<1x128x256xf32>
    %cst_2 = arith.constant dense<0.000000e+00> : vector<1x128xf32>
    %5 = vector.multi_reduction <add>, %4, %cst_2 [2] : vector<1x128x256xf32> to vector<1x128xf32>
    %cst_3 = arith.constant 2.560000e+02 : f32
    %6 = vector.broadcast %cst_3 : f32 to vector<1x128xf32>
    %7 = arith.divf %5, %6 : vector<1x128xf32>
    %8 = math.log %7 : vector<1x128xf32>
    %cst_4 = arith.constant 0.333333343 : f32
    %9 = vector.broadcast %cst_4 : f32 to vector<1x128xf32>
    %10 = arith.mulf %8, %9 : vector<1x128xf32>
    %11 = math.exp %10 : vector<1x128xf32>
    %c0_5 = arith.constant 0 : index
    %c0_6 = arith.constant 0 : index
    %12 = vector.load %arg2[%c0_5, %c0_6] : memref<1x128xf32, #tpu.memory_space<vmem>>, vector<1x128xf32>
    tpu.vector_store %arg2[%c0_5, %c0_6], %11 {strides = array<i32>} : memref<1x128xf32, #tpu.memory_space<vmem>>, vector<1x128xf32>,
    return
  }
  func.func @transform_0(%arg0: i32) -> (i32, i32, i32) {
    %c0_i32 = arith.constant 0 : i32
    %c0_i32_0 = arith.constant 0 : i32
    %c0_i32_1 = arith.constant 0 : i32
    return %arg0, %c0_i32, %c0_i32_0 : i32, i32, i32
  }
  func.func @transform_1(%arg0: i32) -> (i32, i32) {
    %c0_i32 = arith.constant 0 : i32
    %c0_i32_0 = arith.constant 0 : i32
    return %arg0, %c0_i32 : i32, i32
  }
}

</mosaic_0001>

<bundles_post_ra>
// kernel: tpu_custom_call.1
= control target key start
LH: loop header
LB: loop body
LE: loop exit
PB: predicated region body
PF: predicated region fallthrough
CT: control target
= control target key end

     0   :  { %6 = vsyncpa [#allocation3], 0  ;;  %s645_s0 = inlined_call_operand.hbm [shape: f32[1,128,256], index: 0, kind: input, shape index: {}]   ;;  %s646_s1 = inlined_call_operand.hbm [shape: f32[1,128], index: 1, kind: output, shape index: {}]  }
   0x1   :  { %7 = vsyncpa [#allocation4], 0  ;;  %s556_s6 = smov [#allocation2]   ;;  %s508_s10 = scalar_lea.hbm %s645_s0, 4096 }
   0x2   :  { %s13_s7 = sshll.u32 %s556_s6, 4  ;;  %p509_p0 = scmp.ne.s32.totalorder %s645_s0, %s508_s10  ;;  %s14_s7 = int_to_ptr.vmem [resolvable:$true] %s13_s7 }
   0x3   :  { %p512_p1 = scmp.lt.u32.totalorder %s508_s10, %s645_s0 }
   0x5   :  { %p514_p2 = pnand %p512_p1, %p509_p0 }
   0x7   :  { %517 = shalt.err (!%p514_p2)
}
   0x8   :  { %s518_s15 = scalar_lea.vmem %s14_s7, 4096  ;;  %p523_p4 = scmp.lt.s32.totalorder %s14_s7, %s14_s7 }
   0x9   :  { %p519_p3 = scmp.ne.s32.totalorder %s14_s7, %s518_s15  ;;  %p524_p5 = scmp.lt.s32.totalorder %s518_s15, %s518_s15 }
   0xb   :  { %p525_p6 = por %p524_p5, %p523_p4 }
   0xd   :  { %p526_p7 = pnand %p525_p6, %p519_p3 }
   0xf   :  { %529 = shalt.err (!%p526_p7)
}
  0x10   :  { %s557_s16 = smov 256   ;;  %s558_s17 = smov 16  }
  0x11   :  { %19 = dma.hbm_to_vmem [thread:$0]  %s645_s0, 4096, %s14_s7, [#allocation3], %s557_s16, %s557_s16, %s558_s17  }
  0x12   :  { %552 = dma.done.wait [#allocation3], 4096  }
  0x13   :  { %553 = vsyncadd [#allocation3], 4294963200  ;;  %v23_v0 = vld [vmem:[#allocation2] sm:$0xff]  ;;  %v24_v1 = vld [vmem:[#allocation2 + $0x8] sm:$0xff]  ;;  %vm323_vm0 = vcmask 130112   ;;  %vm330_vm1 = vcmask 195712  }
  0x14   :  { %v27_v2 = vld [vmem:[#allocation2 + $0x20] sm:$0xff]  ;;  %v55_v3 = vmax.f32 %v23_v0, 1e-06  ;;  %v56_v4 = vmax.f32 %v24_v1, 1e-06  ;;  %v28_v5 = vld [vmem:[#allocation2 + $0x28] sm:$0xff] }
  0x15   :  { %v25_v6 = vld [vmem:[#allocation2 + $0x10] sm:$0xff]  ;;  %v59_v7 = vmax.f32 %v27_v2, 1e-06  ;;  %v60_v8 = vmax.f32 %v28_v5, 1e-06  ;;  %v26_v9 = vld [vmem:[#allocation2 + $0x18] sm:$0xff] }
  0x16   :  { %v29_v10 = vld [vmem:[#allocation2 + $0x30] sm:$0xff]  ;;  %v87_v11 = vmul.f32 %v55_v3, %v55_v3  ;;  %v88_v12 = vmul.f32 %v56_v4, %v56_v4  ;;  %v57_v13 = vmax.f32 %v25_v6, 1e-06  ;;  %v58_v14 = vmax.f32 %v26_v9, 1e-06  ;;  %v30_v15 = vld [vmem:[#allocation2 + $0x38] sm:$0xff] }
  0x17   :  { %v91_v16 = vmul.f32 %v59_v7, %v59_v7  ;;  %v92_v17 = vmul.f32 %v60_v8, %v60_v8  ;;  %v61_v18 = vmax.f32 %v29_v10, 1e-06  ;;  %v62_v19 = vmax.f32 %v30_v15, 1e-06  ;;  %v31_v20 = vld [vmem:[#allocation2 + $0x40] sm:$0xff]  ;;  %v32_v25 = vld [vmem:[#allocation2 + $0x48] sm:$0xff] }
  0x18   :  { %v119_v21 = vmul.f32 %v87_v11, %v55_v3  ;;  %v120_v22 = vmul.f32 %v88_v12, %v56_v4  ;;  %v89_v23 = vmul.f32 %v57_v13, %v57_v13  ;;  %v90_v24 = vmul.f32 %v58_v14, %v58_v14  ;;  %v33_v30 = vld [vmem:[#allocation2 + $0x50] sm:$0xff]  ;;  %v34_v31 = vld [vmem:[#allocation2 + $0x58] sm:$0xff]  ;;  %v35_v36 = vld [vmem:[#allocation2 + $0x60] sm:$0xff]  ;;  %s559_s0 = smov [#allocation5]  }
  0x19   :  { %v123_v26 = vmul.f32 %v91_v16, %v59_v7  ;;  %v124_v27 = vmul.f32 %v92_v17, %v60_v8  ;;  %v93_v28 = vmul.f32 %v61_v18, %v61_v18  ;;  %v94_v29 = vmul.f32 %v62_v19, %v62_v19  ;;  %v36_v37 = vld [vmem:[#allocation2 + $0x68] sm:$0xff]  ;;  %v37_v42 = vld [vmem:[#allocation2 + $0x70] sm:$0xff]  ;;  %v38_v47 = vld [vmem:[#allocation2 + $0x78] sm:$0xff]  ;;  %s431_s20 = sshll.u32 %s559_s0, 4  ;;  %s432_s20 = int_to_ptr.vmem [resolvable:$true] %s431_s20 }
  0x1a   :  { %v151_v32 = vadd.f32 %v120_v22, %v119_v21  ;;  %v121_v33 = vmul.f32 %v89_v23, %v57_v13  ;;  %v122_v34 = vmul.f32 %v90_v24, %v58_v14  ;;  %v63_v35 = vmax.f32 %v31_v20, 1e-06  ;;  %v39_v52 = vld [vmem:[#allocation2 + $0x80] sm:$0xff]  ;;  %v40_v61 = vld [vmem:[#allocation2 + $0x88] sm:$0xff]  ;;  %v41_v2 = vld [vmem:[#allocation2 + $0x90] sm:$0xff]  ;;  %s530_s21 = scalar_lea.vmem %s432_s20, 16  ;;  %p535_p9 = scmp.lt.s32.totalorder %s432_s20, %s432_s20 }
  0x1b   :  { %v157_v38 = vadd.f32 %v124_v27, %v123_v26  ;;  %v125_v39 = vmul.f32 %v93_v28, %v61_v18  ;;  %v126_v40 = vmul.f32 %v94_v29, %v62_v19  ;;  %v64_v41 = vmax.f32 %v32_v25, 1e-06  ;;  %v42_v3 = vld [vmem:[#allocation2 + $0x98] sm:$0xff]  ;;  %v43_v8 = vld [vmem:[#allocation2 + $0xa0] sm:$0xff]  ;;  %v44_v9 = vld [vmem:[#allocation2 + $0xa8] sm:$0xff]  ;;  %p531_p8 = scmp.ne.s32.totalorder %s432_s20, %s530_s21  ;;  %s534_s22 = scalar_lea.vmem %s432_s20, 32 }
  0x1c   :  { %152 = vadd.xlane.f32.xlu0 %v151_v32  ;;  %v154_v43 = vadd.f32 %v122_v34, %v121_v33  ;;  %v95_v44 = vmul.f32 %v63_v35, %v63_v35  ;;  %v65_v45 = vmax.f32 %v33_v30, 1e-06  ;;  %v66_v46 = vmax.f32 %v34_v31, 1e-06  ;;  %v45_v14 = vld [vmem:[#allocation2 + $0xb0] sm:$0xff]  ;;  %v46_v19 = vld [vmem:[#allocation2 + $0xb8] sm:$0xff]  ;;  %p536_p10 = scmp.lt.s32.totalorder %s534_s22, %s530_s21 }
  0x1d   :  { %158 = vadd.xlane.f32.xlu1 %v157_v38  ;;  %v160_v48 = vadd.f32 %v126_v40, %v125_v39  ;;  %v96_v49 = vmul.f32 %v64_v41, %v64_v41  ;;  %v67_v50 = vmax.f32 %v35_v36, 1e-06  ;;  %v68_v51 = vmax.f32 %v36_v37, 1e-06  ;;  %v47_v24 = vld [vmem:[#allocation2 + $0xc0] sm:$0xff]  ;;  %v48_v33 = vld [vmem:[#allocation2 + $0xc8] sm:$0xff] }
  0x1e   :  { %v127_v53 = vmul.f32 %v95_v44, %v63_v35  ;;  %v97_v54 = vmul.f32 %v65_v45, %v65_v45  ;;  %v98_v55 = vmul.f32 %v66_v46, %v66_v46  ;;  %v69_v56 = vmax.f32 %v37_v42, 1e-06  ;;  %v49_v38 = vld [vmem:[#allocation2 + $0xd0] sm:$0xff]  ;;  %v50_v39 = vld [vmem:[#allocation2 + $0xd8] sm:$0xff]  ;;  %v51_v44 = vld [vmem:[#allocation2 + $0xe0] sm:$0xff]  ;;  %p537_p11 = por %p536_p10, %p535_p9 }
  0x1f   :  { %v128_v57 = vmul.f32 %v96_v49, %v64_v41  ;;  %v99_v58 = vmul.f32 %v67_v50, %v67_v50  ;;  %v100_v59 = vmul.f32 %v68_v51, %v68_v51  ;;  %v70_v60 = vmax.f32 %v38_v47, 1e-06 }
  0x20   :  { %155 = vadd.xlane.f32.xlu0 %v154_v43  ;;  %v129_v62 = vmul.f32 %v97_v54, %v65_v45  ;;  %v130_v63 = vmul.f32 %v98_v55, %v66_v46  ;;  %v101_v0 = vmul.f32 %v69_v56, %v69_v56  ;;  %v71_v1 = vmax.f32 %v39_v52, 1e-06  ;;  %v52_v45 = vld [vmem:[#allocation2 + $0xe8] sm:$0xff]  ;;  %v54_v55 = vld [vmem:[#allocation2 + $0xf8] sm:$0xff]  ;;  %p538_p12 = pnand %p537_p11, %p531_p8 }
  0x21   :  { %161 = vadd.xlane.f32.xlu1 %v160_v48  ;;  %v163_v4 = vadd.f32 %v128_v57, %v127_v53  ;;  %v131_v5 = vmul.f32 %v99_v58, %v67_v50  ;;  %v132_v6 = vmul.f32 %v100_v59, %v68_v51  ;;  %v102_v7 = vmul.f32 %v70_v60, %v70_v60  ;;  %v53_v50 = vld [vmem:[#allocation2 + $0xf0] sm:$0xff] }
  0x22   :  { %v166_v10 = vadd.f32 %v130_v63, %v129_v62  ;;  %v133_v11 = vmul.f32 %v101_v0, %v69_v56  ;;  %v72_v12 = vmax.f32 %v40_v61, 1e-06  ;;  %v103_v13 = vmul.f32 %v71_v1, %v71_v1 }
  0x23   :  { %v169_v15 = vadd.f32 %v132_v6, %v131_v5  ;;  %v134_v16 = vmul.f32 %v102_v7, %v70_v60  ;;  %v73_v17 = vmax.f32 %v41_v2, 1e-06  ;;  %v74_v18 = vmax.f32 %v42_v3, 1e-06 }
  0x24   :  { %164 = vadd.xlane.f32.xlu0 %v163_v4  ;;  %v104_v20 = vmul.f32 %v72_v12, %v72_v12  ;;  %v135_v21 = vmul.f32 %v103_v13, %v71_v1  ;;  %v75_v22 = vmax.f32 %v43_v8, 1e-06  ;;  %v76_v23 = vmax.f32 %v44_v9, 1e-06 }
  0x25   :  { %167 = vadd.xlane.f32.xlu1 %v166_v10  ;;  %v172_v25 = vadd.f32 %v134_v16, %v133_v11  ;;  %v105_v26 = vmul.f32 %v73_v17, %v73_v17  ;;  %v106_v27 = vmul.f32 %v74_v18, %v74_v18  ;;  %v77_v28 = vmax.f32 %v45_v14, 1e-06 }
  0x26   :  { %v136_v29 = vmul.f32 %v104_v20, %v72_v12  ;;  %v107_v30 = vmul.f32 %v75_v22, %v75_v22  ;;  %v108_v31 = vmul.f32 %v76_v23, %v76_v23  ;;  %v78_v32 = vmax.f32 %v46_v19, 1e-06 }
  0x27   :  { %v137_v34 = vmul.f32 %v105_v26, %v73_v17  ;;  %v138_v35 = vmul.f32 %v106_v27, %v74_v18  ;;  %v109_v36 = vmul.f32 %v77_v28, %v77_v28  ;;  %v79_v37 = vmax.f32 %v47_v24, 1e-06 }
  0x28   :  { %170 = vadd.xlane.f32.xlu0 %v169_v15  ;;  %v175_v40 = vadd.f32 %v136_v29, %v135_v21  ;;  %v139_v41 = vmul.f32 %v107_v30, %v75_v22  ;;  %v140_v42 = vmul.f32 %v108_v31, %v76_v23  ;;  %v110_v43 = vmul.f32 %v78_v32, %v78_v32 }
  0x29   :  { %173 = vadd.xlane.f32.xlu1 %v172_v25  ;;  %v178_v46 = vadd.f32 %v138_v35, %v137_v34  ;;  %v141_v47 = vmul.f32 %v109_v36, %v77_v28  ;;  %v80_v48 = vmax.f32 %v48_v33, 1e-06  ;;  %v111_v49 = vmul.f32 %v79_v37, %v79_v37 }
  0x2a   :  { %v181_v51 = vadd.f32 %v140_v42, %v139_v41  ;;  %v142_v52 = vmul.f32 %v110_v43, %v78_v32  ;;  %v81_v53 = vmax.f32 %v49_v38, 1e-06  ;;  %v82_v54 = vmax.f32 %v50_v39, 1e-06 }
  0x2b   :  { %v112_v56 = vmul.f32 %v80_v48, %v80_v48  ;;  %v143_v57 = vmul.f32 %v111_v49, %v79_v37  ;;  %v83_v58 = vmax.f32 %v51_v44, 1e-06  ;;  %v84_v59 = vmax.f32 %v52_v45, 1e-06 }
  0x2c   :  { %176 = vadd.xlane.f32.xlu0 %v175_v40  ;;  %v184_v60 = vadd.f32 %v142_v52, %v141_v47  ;;  %v113_v61 = vmul.f32 %v81_v53, %v81_v53  ;;  %v114_v62 = vmul.f32 %v82_v54, %v82_v54  ;;  %v85_v63 = vmax.f32 %v53_v50, 1e-06 }
  0x2d   :  { %179 = vadd.xlane.f32.xlu1 %v178_v46  ;;  %v144_v0 = vmul.f32 %v112_v56, %v80_v48  ;;  %v115_v1 = vmul.f32 %v83_v58, %v83_v58  ;;  %v116_v2 = vmul.f32 %v84_v59, %v84_v59  ;;  %v86_v3 = vmax.f32 %v54_v55, 1e-06 }
  0x2e   :  { %v145_v4 = vmul.f32 %v113_v61, %v81_v53  ;;  %v146_v5 = vmul.f32 %v114_v62, %v82_v54  ;;  %v117_v6 = vmul.f32 %v85_v63, %v85_v63  ;;  %v312_v28 = vlaneseq }
  0x2f   :  { %v118_v7 = vmul.f32 %v86_v3, %v86_v3  ;;  %v187_v8 = vadd.f32 %v144_v0, %v143_v57  ;;  %v147_v9 = vmul.f32 %v115_v1, %v83_v58  ;;  %v148_v10 = vmul.f32 %v116_v2, %v84_v59 }
  0x30   :  { %182 = vadd.xlane.f32.xlu0 %v181_v51  ;;  %v190_v11 = vadd.f32 %v146_v5, %v145_v4  ;;  %v149_v12 = vmul.f32 %v117_v6, %v85_v63  ;;  %v582_v37 = vand.u32 127, %v312_v28  ;;  %v584_v50 = vshrl.u32 %v312_v28, 7 }
  0x31   :  { %185 = vadd.xlane.f32.xlu1 %v184_v60  ;;  %v150_v13 = vmul.f32 %v118_v7, %v86_v3  ;;  %v193_v14 = vadd.f32 %v148_v10, %v147_v9  ;;  %vm337_vm2 = vcmask 261312   ;;  %vm344_vm3 = vcmask 326912  }
  0x32   :  { %v587_v51 = vadd.s32 4294967280, %v582_v37  ;;  %v590_v55 = vadd.s32 4294967288, %v582_v37  ;;  %v593_v63 = vadd.s32 4294967272, %v582_v37  ;;  %v316_v2 = vsub.s32 %v582_v37, %v584_v50 }
  0x33   :  { %v196_v15 = vadd.f32 %v150_v13, %v149_v12  ;;  %vm351_vm4 = vcmask 392512   ;;  %vm358_vm5 = vcmask 458112   ;;  %vm365_vm6 = vcmask 523712  }
  0x34   :  { %188 = vadd.xlane.f32.xlu0 %v187_v8  ;;  %v328_v3 = vsub.s32 %v587_v51, %v584_v50  ;;  %v321_v7 = vsub.s32 %v590_v55, %v584_v50  ;;  %vm372_vm7 = vcmask 589312   ;;  %vm379_vm8 = vcmask 654912  }
  0x35   :  { %191 = vadd.xlane.f32.xlu1 %v190_v11  ;;  %vm386_vm9 = vcmask 720512   ;;  %vm393_vm10 = vcmask 786112   ;;  %vm400_vm11 = vcmask 851712   ;;  %vm407_vm12 = vcmask 917312  }
  0x36   :  { %vm414_vm13 = vcmask 982912   ;;  %vm421_vm14 = vcmask 1048512  }
  0x38   :  { %194 = vadd.xlane.f32.xlu0 %v193_v14 }
  0x39   :  { %197 = vadd.xlane.f32.xlu1 %v196_v15  ;;  %v335_v15 = vsub.s32 %v593_v63, %v584_v50 }
  0xa9   :  { %v153_v16 = vpop.xlane.xlu0 %152 }
  0xaa   :  { %v200_v17 = vmul.f32 0.00390625, %v153_v16  ;;  %v159_v18 = vpop.xlane.xlu1 %158 }
  0xab   :  { %v202_v19 = vmul.f32 0.00390625, %v159_v18  ;;  %v339_v18 = vadd.s32 4294967264, %v582_v37 }
  0xac   :  { %444 = vlog2.f32 %v200_v17 }
  0xad   :  { %446 = vlog2.f32 %v202_v19  ;;  %v156_v20 = vpop.xlane.xlu0 %155  ;;  %v346_v19 = vadd.s32 4294967256, %v582_v37 }
  0xae   :  { %v201_v21 = vmul.f32 0.00390625, %v156_v20  ;;  %v162_v22 = vpop.xlane.xlu1 %161 }
  0xaf   :  { %v203_v23 = vmul.f32 0.00390625, %v162_v22 }
  0xb0   :  { %448 = vlog2.f32 %v201_v21 }
  0xb1   :  { %450 = vlog2.f32 %v203_v23  ;;  %v165_v24 = vpop.xlane.xlu0 %164 }
  0xb2   :  { %v204_v25 = vmul.f32 0.00390625, %v165_v24  ;;  %v168_v26 = vpop.xlane.xlu1 %167 }
  0xb3   :  { %v205_v27 = vmul.f32 0.00390625, %v168_v26 }
  0xb4   :  { %452 = vlog2.f32 %v204_v25 }
  0xb5   :  { %454 = vlog2.f32 %v205_v27  ;;  %v171_v29 = vpop.xlane.xlu0 %170 }
  0xb6   :  { %v445_v30 = vpop.eup %444  ;;  %v206_v31 = vmul.f32 0.00390625, %v171_v29  ;;  %v174_v32 = vpop.xlane.xlu1 %173 }
  0xb7   :  { %v447_v33 = vpop.eup %446  ;;  %v217_v34 = vmul.f32 0.6931472, %v445_v30  ;;  %v207_v35 = vmul.f32 0.00390625, %v174_v32 }
  0xb8   :  { %v221_v36 = vmul.f32 0.6931472, %v447_v33  ;;  %456 = vlog2.f32 %v206_v31  ;;  %v353_v31 = vadd.s32 4294967248, %v582_v37 }
  0xb9   :  { %v248_v38 = vmul.f32 0.33333334, %v217_v34  ;;  %458 = vlog2.f32 %v207_v35  ;;  %v177_v39 = vpop.xlane.xlu0 %176  ;;  %v342_v34 = vsub.s32 %v339_v18, %v584_v50  ;;  %v349_v35 = vsub.s32 %v346_v19, %v584_v50 }
  0xba   :  { %v449_v40 = vpop.eup %448  ;;  %v250_v41 = vmul.f32 0.33333334, %v221_v36  ;;  %v208_v42 = vmul.f32 0.00390625, %v177_v39  ;;  %v180_v43 = vpop.xlane.xlu1 %179  ;;  %v360_v39 = vadd.s32 4294967240, %v582_v37 }
  0xbb   :  { %v451_v44 = vpop.eup %450  ;;  %v264_v45 = vmul.f32 1.442695, %v248_v38  ;;  %v219_v46 = vmul.f32 0.6931472, %v449_v40  ;;  %v209_v47 = vmul.f32 0.00390625, %v180_v43 }
  0xbc   :  { %v268_v48 = vmul.f32 1.442695, %v250_v41  ;;  %v223_v49 = vmul.f32 0.6931472, %v451_v44  ;;  %460 = vlog2.f32 %v208_v42 }
  0xbd   :  { %462 = vpow2.f32 %v264_v45  ;;  %v249_v52 = vmul.f32 0.33333334, %v219_v46  ;;  %v183_v53 = vpop.xlane.xlu0 %182 }
  0xbe   :  { %v453_v54 = vpop.eup %452  ;;  %464 = vpow2.f32 %v268_v48  ;;  %v251_v56 = vmul.f32 0.33333334, %v223_v49  ;;  %v210_v57 = vmul.f32 0.00390625, %v183_v53  ;;  %v186_v58 = vpop.xlane.xlu1 %185 }
  0xbf   :  { %v455_v59 = vpop.eup %454  ;;  %v266_v60 = vmul.f32 1.442695, %v249_v52  ;;  %v225_v61 = vmul.f32 0.6931472, %v453_v54  ;;  %466 = vlog2.f32 %v209_v47  ;;  %v211_v62 = vmul.f32 0.00390625, %v186_v58 }
  0xc0   :  { %v270_v0 = vmul.f32 1.442695, %v251_v56  ;;  %v227_v1 = vmul.f32 0.6931472, %v455_v59  ;;  %468 = vlog2.f32 %v210_v57  ;;  %v356_v47 = vsub.s32 %v353_v31, %v584_v50 }
  0xc1   :  { %470 = vpow2.f32 %v266_v60  ;;  %v252_v4 = vmul.f32 0.33333334, %v225_v61  ;;  %v189_v5 = vpop.xlane.xlu0 %188  ;;  %v367_v56 = vadd.s32 4294967232, %v582_v37  ;;  %v374_v61 = vadd.s32 4294967224, %v582_v37 }
  0xc2   :  { %v457_v6 = vpop.eup %456  ;;  %472 = vpow2.f32 %v270_v0  ;;  %v253_v8 = vmul.f32 0.33333334, %v227_v1  ;;  %v212_v9 = vmul.f32 0.00390625, %v189_v5  ;;  %v192_v10 = vpop.xlane.xlu1 %191  ;;  %v388_v31 = vadd.s32 4294967208, %v582_v37 }
  0xc3   :  { %v459_v11 = vpop.eup %458  ;;  %v272_v12 = vmul.f32 1.442695, %v252_v4  ;;  %v229_v13 = vmul.f32 0.6931472, %v457_v6  ;;  %474 = vlog2.f32 %v211_v62  ;;  %v213_v14 = vmul.f32 0.00390625, %v192_v10 }
  0xc4   :  { %v274_v16 = vmul.f32 1.442695, %v253_v8  ;;  %v231_v17 = vmul.f32 0.6931472, %v459_v11  ;;  %476 = vlog2.f32 %v212_v9  ;;  %v363_v6 = vsub.s32 %v360_v39, %v584_v50 }
  0xc5   :  { %478 = vpow2.f32 %v272_v12  ;;  %v254_v20 = vmul.f32 0.33333334, %v229_v13  ;;  %v195_v21 = vpop.xlane.xlu0 %194  ;;  %v370_v13 = vsub.s32 %v367_v56, %v584_v50  ;;  %v377_v19 = vsub.s32 %v374_v61, %v584_v50 }
  0xc6   :  { %v461_v22 = vpop.eup %460  ;;  %480 = vpow2.f32 %v274_v16  ;;  %v255_v23 = vmul.f32 0.33333334, %v231_v17  ;;  %v214_v24 = vmul.f32 0.00390625, %v195_v21  ;;  %v198_v25 = vpop.xlane.xlu1 %197 }
  0xc7   :  { %v463_v26 = vpop.eup %462  ;;  %v276_v27 = vmul.f32 1.442695, %v254_v20  ;;  %v233_v28 = vmul.f32 0.6931472, %v461_v22  ;;  %482 = vlog2.f32 %v213_v14  ;;  %v215_v29 = vmul.f32 0.00390625, %v198_v25 }
  0xc8   :  { %v465_v30 = vpop.eup %464  ;;  %v278_v32 = vmul.f32 1.442695, %v255_v23  ;;  %484 = vlog2.f32 %v214_v24  ;;  %v317_v45 = vrot.slane %v463_v26, %v316_v2  ;;  %v381_v14 = vadd.s32 4294967216, %v582_v37 }
  0xc9   :  { %v467_v33 = vpop.eup %466  ;;  %486 = vpow2.f32 %v276_v27  ;;  %v256_v36 = vmul.f32 0.33333334, %v233_v28  ;;  %v329_v51 = vrot.slane %v465_v30, %v328_v3 }
  0xca   :  { %v469_v38 = vpop.eup %468  ;;  %488 = vpow2.f32 %v278_v32  ;;  %v235_v40 = vmul.f32 0.6931472, %v467_v33 }
  0xcb   :  { %v471_v41 = vpop.eup %470  ;;  %v280_v42 = vmul.f32 1.442695, %v256_v36  ;;  %v237_v43 = vmul.f32 0.6931472, %v469_v38  ;;  %490 = vlog2.f32 %v215_v29  ;;  %v384_v29 = vsub.s32 %v381_v14, %v584_v50 }
  0xcc   :  { %v473_v44 = vpop.eup %472  ;;  %v322_v46 = vrot.slane %v471_v41, %v321_v7  ;;  %v257_v48 = vmul.f32 0.33333334, %v235_v40 }
  0xcd   :  { %v475_v49 = vpop.eup %474  ;;  %v336_v52 = vrot.slane %v473_v44, %v335_v15  ;;  %492 = vpow2.f32 %v280_v42  ;;  %v258_v53 = vmul.f32 0.33333334, %v237_v43  ;;  %v391_v42 = vsub.s32 %v388_v31, %v584_v50 }
  0xce   :  { %v477_v54 = vpop.eup %476  ;;  %v324_v55 = vsel %vm323_vm0, %v322_v46, %v317_v45  ;;  %v282_v57 = vmul.f32 1.442695, %v257_v48  ;;  %v239_v58 = vmul.f32 0.6931472, %v475_v49  ;;  %v402_v43 = vadd.s32 4294967192, %v582_v37 }
  0xcf   :  { %v479_v59 = vpop.eup %478  ;;  %v331_v60 = vsel %vm330_vm1, %v329_v51, %v324_v55  ;;  %v284_v62 = vmul.f32 1.442695, %v258_v53  ;;  %v241_v63 = vmul.f32 0.6931472, %v477_v54  ;;  %v409_v46 = vadd.s32 4294967184, %v582_v37 }
  0xd0   :  { %v481_v0 = vpop.eup %480  ;;  %v338_v1 = vsel %vm337_vm2, %v336_v52, %v331_v60  ;;  %v343_v2 = vrot.slane %v479_v59, %v342_v34  ;;  %494 = vpow2.f32 %v282_v57  ;;  %v259_v3 = vmul.f32 0.33333334, %v239_v58 }
  0xd1   :  { %v483_v4 = vpop.eup %482  ;;  %v350_v5 = vrot.slane %v481_v0, %v349_v35  ;;  %496 = vpow2.f32 %v284_v62  ;;  %v260_v7 = vmul.f32 0.33333334, %v241_v63  ;;  %v395_v34 = vadd.s32 4294967200, %v582_v37 }
  0xd2   :  { %v485_v8 = vpop.eup %484  ;;  %v345_v9 = vsel %vm344_vm3, %v343_v2, %v338_v1  ;;  %v286_v10 = vmul.f32 1.442695, %v259_v3  ;;  %v243_v11 = vmul.f32 0.6931472, %v483_v4  ;;  %v405_v53 = vsub.s32 %v402_v43, %v584_v50 }
  0xd3   :  { %v487_v12 = vpop.eup %486  ;;  %v288_v15 = vmul.f32 1.442695, %v260_v7  ;;  %v245_v16 = vmul.f32 0.6931472, %v485_v8  ;;  %v352_v22 = vsel %vm351_vm4, %v350_v5, %v345_v9  ;;  %v398_v45 = vsub.s32 %v395_v34, %v584_v50 }
  0xd4   :  { %v489_v17 = vpop.eup %488  ;;  %v357_v18 = vrot.slane %v487_v12, %v356_v47  ;;  %498 = vpow2.f32 %v286_v10  ;;  %v261_v20 = vmul.f32 0.33333334, %v243_v11  ;;  %v416_v54 = vadd.s32 4294967176, %v582_v37 }
  0xd5   :  { %v491_v21 = vpop.eup %490  ;;  %v364_v23 = vrot.slane %v489_v17, %v363_v6  ;;  %500 = vpow2.f32 %v288_v15  ;;  %v262_v24 = vmul.f32 0.33333334, %v245_v16  ;;  %v412_v56 = vsub.s32 %v409_v46, %v584_v50 }
  0xd6   :  { %v359_v25 = vsel %vm358_vm5, %v357_v18, %v352_v22  ;;  %v290_v26 = vmul.f32 1.442695, %v261_v20  ;;  %v247_v27 = vmul.f32 0.6931472, %v491_v21  ;;  %v419_v62 = vsub.s32 %v416_v54, %v584_v50 }
  0xd7   :  { %v493_v28 = vpop.eup %492  ;;  %v292_v30 = vmul.f32 1.442695, %v262_v24  ;;  %v366_v35 = vsel %vm365_vm6, %v364_v23, %v359_v25 }
  0xd8   :  { %v371_v32 = vrot.slane %v493_v28, %v370_v13  ;;  %502 = vpow2.f32 %v290_v26  ;;  %v263_v33 = vmul.f32 0.33333334, %v247_v27 }
  0xd9   :  { %504 = vpow2.f32 %v292_v30 }
  0xda   :  { %v495_v36 = vpop.eup %494  ;;  %v294_v38 = vmul.f32 1.442695, %v263_v33  ;;  %v373_v39 = vsel %vm372_vm7, %v371_v32, %v366_v35 }
  0xdb   :  { %v497_v40 = vpop.eup %496  ;;  %v378_v41 = vrot.slane %v495_v36, %v377_v19 }
  0xdc   :  { %v385_v44 = vrot.slane %v497_v40, %v384_v29  ;;  %506 = vpow2.f32 %v294_v38 }
  0xdd   :  { %v380_v47 = vsel %vm379_vm8, %v378_v41, %v373_v39 }
  0xde   :  { %v499_v48 = vpop.eup %498  ;;  %v387_v49 = vsel %vm386_vm9, %v385_v44, %v380_v47 }
  0xdf   :  { %v501_v51 = vpop.eup %500  ;;  %v392_v52 = vrot.slane %v499_v48, %v391_v42 }
  0xe0   :  { %v399_v55 = vrot.slane %v501_v51, %v398_v45 }
  0xe1   :  { %v394_v57 = vsel %vm393_vm10, %v392_v52, %v387_v49 }
  0xe2   :  { %v503_v58 = vpop.eup %502  ;;  %v401_v59 = vsel %vm400_vm11, %v399_v55, %v394_v57 }
  0xe3   :  { %v505_v60 = vpop.eup %504  ;;  %v406_v61 = vrot.slane %v503_v58, %v405_v53 }
  0xe4   :  { %v413_v63 = vrot.slane %v505_v60, %v412_v56 }
  0xe5   :  { %v408_v0 = vsel %vm407_vm12, %v406_v61, %v401_v59 }
  0xe6   :  { %v507_v1 = vpop.eup %506  ;;  %v415_v2 = vsel %vm414_vm13, %v413_v63, %v408_v0 }
  0xe7   :  { %v420_v37 = vrot.slane %v507_v1, %v419_v62 }
  0xe9   :  { %v422_v3 = vsel %vm421_vm14, %v420_v37, %v415_v2 }
  0xea   :  { %424 = vst [vmem:[#allocation5] sm:$0x1] %v422_v3 }
  0xeb   :  { %541 = shalt.err (!%p538_p12)
}
  0xec   :  { %s542_s25 = scalar_lea.hbm %s646_s1, 16 }
  0xed   :  { %p543_p13 = scmp.ne.s32.totalorder %s646_s1, %s542_s25  ;;  %p546_p0 = scmp.lt.u32.totalorder %s542_s25, %s646_s1 }
  0xef   :  { %p548_p1 = pnand %p546_p0, %p543_p13 }
  0xf1   :  { %551 = shalt.err (!%p548_p1)
}
  0xf2   :  { %434 = dma.vmem_to_hbm [thread:$0]  %s432_s20, 16, %s646_s1, [#allocation4]  }
  0xf3   :  { %554 = dma.done.wait [#allocation4], 16  }
  0xf4   :  { %555 = vsyncadd [#allocation4], 4294967280 }
  0xf5   :  { %438 = vsyncpa [#allocation3], 1 }
  0xf6   :  { %439 = vsyncpa [#allocation4], 1 }

</bundles_post_ra>
